<compile_context>
chip_gen: v5e
topology: v5e:2x2
jax: 0.10.0
libtpu: 0.0.40
codegen_flags: <defaults>
</compile_context>

<pallas_src>
import math

import jax
import jax.numpy as jnp
from jax.experimental import pallas as pl
from jax.experimental.pallas import tpu as pltpu

_LANES = 128
_MAX_TILE_BYTES = 8 * 1024 * 1024  # keeps 4x double-buffered blocks « 64 MiB (v7x VMEM)


def _perturbation_kernel(scale_ref, x_ref, o_ref):
    # scale lives in SMEM as f32; the multiply promotes bf16/f16 inputs to f32
    # and the result is cast back to the output dtype.  Safe on v5e (no bf16
    # VALU) and numerically identical to scaling in f32 everywhere.
    o_ref[...] = (x_ref[...] * scale_ref[0, 0]).astype(o_ref.dtype)


def _round_up(a: int, b: int) -> int:
    return -(-a // b) * b


def _sublane_pack(itemsize: int) -> int:
    # Native packed sublane count: 8 for 32-bit, 16 for 16-bit, 32 for 8-bit.
    return max(8, 32 // itemsize)


def _pick_tiling(n_main: int, itemsize: int, target_tile_bytes: int):
    """Choose a lane-dense (R, C) view and a row-tile tr for n_main elements."""
    pack = _sublane_pack(itemsize)

    # Widest lane dim that divides n_main and still leaves a reasonably tall R.
    C = _LANES
    for cand in (16384, 8192, 4096, 2048, 1024, 512, 256, 128):
        if n_main % cand == 0 and (n_main // cand) >= 2 * pack:
            C = cand
            break
    R = n_main // C

    tile_bytes = min(max(target_tile_bytes, itemsize * C * pack), _MAX_TILE_BYTES)
    tr_cap = max(pack, (tile_bytes // (itemsize * C)) // pack * pack)

    if R <= pack:
        return R, C, R, 1  # single full-extent block (allowed even if R < 8)

    tr = min(tr_cap, _round_up(R, pack))
    steps = -(-R // tr)
    if steps == 1:
        # Whole array fits one tile: split in two for pipelining + v7x megacore.
        half = _round_up(-(-R // 2), pack)
        if pack <= half < R:
            tr = half
    elif steps % 2 == 1:
        # Prefer an even step count so the parallel axis splits evenly across
        # v7x's 2 TensorCores (neutral on single-core v5e/v6e).
        cand = _round_up(-(-R // (steps + 1)), pack)
        if cand >= pack and (-(-R // cand)) % 2 == 0:
            tr = cand
    steps = -(-R // tr)
    return R, C, tr, steps


def _run_kernel(x2: jax.Array, scale_arr: jax.Array, tr: int, steps: int,
                *, alias: bool = False) -> jax.Array:
    R, C = x2.shape
    itemsize = jnp.dtype(x2.dtype).itemsize
    block_bytes = tr * C * itemsize
    # Explicit scoped-VMEM budget: double-buffered input + output blocks plus
    # headroom; independent of the per-generation defaults (16/32/32 MiB) and
    # comfortably below v7x's 64 MiB physical VMEM.
    vmem_limit = min(4 * block_bytes + 2 * 1024 * 1024, 48 * 1024 * 1024)
    n_elems = R * C

    kwargs = {}
    if alias:
        kwargs["input_output_aliases"] = {1: 0}  # x2 (input 1) -> output 0

    return pl.pallas_call(
        _perturbation_kernel,
        out_shape=jax.ShapeDtypeStruct((R, C), x2.dtype),
        grid=(steps,),
        in_specs=[
            pl.BlockSpec(memory_space=pltpu.MemorySpace.SMEM),   # (1,1) scale
            pl.BlockSpec((tr, C), lambda i: (i, 0)),
        ],
        out_specs=pl.BlockSpec((tr, C), lambda i: (i, 0)),
        compiler_params=pltpu.CompilerParams(
            dimension_semantics=("parallel",),
            vmem_limit_bytes=vmem_limit,
        ),
        cost_estimate=pl.CostEstimate(
            flops=n_elems,
            transcendentals=0,
            bytes_accessed=2 * n_elems * itemsize,
        ),
        **kwargs,
    )(scale_arr, x2)


def perturbation(
    x: jax.Array,
    error: float,
    *,
    target_tile_bytes: int = 4 * 1024 * 1024,
    donate: bool = False,
) -> jax.Array:
    """Elementwise x * (1 + error) via a Pallas TPU kernel."""
    orig_shape = x.shape
    scale = 1.0 + float(error)

    if not jnp.issubdtype(x.dtype, jnp.floating):
        # TODO(synk): integer inputs promote to float in PyTorch (int * float
        # scalar); a Pallas kernel adds nothing here, so use plain XLA.
        return x * jnp.float32(scale)

    n = math.prod(orig_shape) if orig_shape else 1
    if n == 0:
        return x

    itemsize = jnp.dtype(x.dtype).itemsize
    scale_arr = jnp.full((1, 1), scale, dtype=jnp.float32)
    flat = x.reshape(-1)

    n_tail = n % _LANES
    n_main = n - n_tail

    if n_main == 0:
        # Fewer than 128 elements: one full-extent block, no padding needed.
        out = _run_kernel(flat.reshape(1, n), scale_arr, 1, 1, alias=donate)
        return out.reshape(orig_shape)

    R, C, tr, steps = _pick_tiling(n_main, itemsize, target_tile_bytes)
    main = flat[:n_main].reshape(R, C) if n_tail else flat.reshape(R, C)
    out_main = _run_kernel(main, scale_arr, tr, steps,
                           alias=donate and n_tail == 0)
    out_flat = out_main.reshape(-1)

    if n_tail:
        # <=127-element tail handled by XLA; avoids the pad + final-slice round
        # trip (a full extra read+write pass) of the naive ragged path.
        # TODO(synk): a fully fused variant could mask the tail inside the kernel.
        tail = (flat[n_main:].astype(jnp.float32) * scale).astype(x.dtype)
        out_flat = jnp.concatenate([out_flat, tail])

    return out_flat.reshape(orig_shape)


if __name__ == "__main__":
    key = jax.random.PRNGKey(0)
    # Small NCHW input consistent with the module: B=2, C=4, H=16, W=16.
    x = jax.random.normal(key, (2, 4, 16, 16), dtype=jnp.float32)
    error = 0.1

    y = jax.block_until_ready(perturbation(x, error))

    # Reference (same semantics as the PyTorch module).
    y_ref = x * (1.0 + error)
    assert y.shape == x.shape and y.dtype == x.dtype
    assert jnp.allclose(y, y_ref, rtol=1e-6, atol=1e-6), "mismatch vs reference"

    print("KERNEL_OK")
</pallas_src>

<mosaic_0001>
module attributes {stable_mosaic.version = 11 : i64} {
  func.func @_perturbation_kernel(%arg0: i32, %arg1: memref<1x1xf32, #tpu.memory_space<smem>>, %arg2: memref<8x128xf32, #tpu.memory_space<vmem>>, %arg3: memref<8x128xf32, #tpu.memory_space<vmem>>) attributes {dimension_semantics = [#tpu.dimension_semantics<parallel>], iteration_bounds = array<i64: 2>, scalar_prefetch = 0 : i64, scratch_operands = 0 : i64, tpu.core_type = #tpu.core_type<tc>, window_params = [{transform_indices = @transform_0, window_bounds = array<i64: 1, 1>}, {transform_indices = @transform_1, window_bounds = array<i64: 8, 128>}, {transform_indices = @transform_2, window_bounds = array<i64: 8, 128>}]} {
    %c0 = arith.constant 0 : index
    %c0_0 = arith.constant 0 : index
    %0 = vector.load %arg2[%c0, %c0_0] : memref<8x128xf32, #tpu.memory_space<vmem>>, vector<8x128xf32>
    %c0_1 = arith.constant 0 : index
    %c0_2 = arith.constant 0 : index
    %1 = memref.load %arg1[%c0_1, %c0_2] : memref<1x1xf32, #tpu.memory_space<smem>>
    %2 = vector.broadcast %1 : f32 to vector<8x128xf32>
    %3 = arith.mulf %0, %2 : vector<8x128xf32>
    %c0_3 = arith.constant 0 : index
    %c0_4 = arith.constant 0 : index
    %4 = vector.load %arg3[%c0_3, %c0_4] : memref<8x128xf32, #tpu.memory_space<vmem>>, vector<8x128xf32>
    tpu.vector_store %arg3[%c0_3, %c0_4], %3 {strides = array<i32>} : memref<8x128xf32, #tpu.memory_space<vmem>>, vector<8x128xf32>,
    return
  }
  func.func @transform_0(%arg0: i32) -> (i32, i32) {
    %c0_i32 = arith.constant 0 : i32
    %c0_i32_0 = arith.constant 0 : i32
    %c0_i32_1 = arith.constant 0 : i32
    return %c0_i32, %c0_i32_0 : i32, i32
  }
  func.func @transform_1(%arg0: i32) -> (i32, i32) {
    %c0_i32 = arith.constant 0 : i32
    %c0_i32_0 = arith.constant 0 : i32
    return %arg0, %c0_i32 : i32, i32
  }
  func.func @transform_2(%arg0: i32) -> (i32, i32) {
    %c0_i32 = arith.constant 0 : i32
    %c0_i32_0 = arith.constant 0 : i32
    return %arg0, %c0_i32 : i32, i32
  }
}

</mosaic_0001>

<bundles_post_ra>
// kernel: tpu_custom_call.1
= control target key start
LH: loop header
LB: loop body
LE: loop exit
PB: predicated region body
PF: predicated region fallthrough
CT: control target
= control target key end

     0   :  { %s554_s0 = inlined_call_operand.<no memory space> [shape: f32[1,1], index: 0, kind: input, shape index: {}]   ;;  %s555_s1 = inlined_call_operand.hbm [shape: f32[16,128], index: 1, kind: input, shape index: {}]   ;;  %s556_s2 = inlined_call_operand.hbm [shape: f32[16,128], index: 2, kind: output, shape index: {}]  }
   0x1   :  { %7 = sst [smem:[#allocation2]] %s554_s0 }
   0x2   :  { %8 = vsyncpa [#allocation4], 0 }
   0x3   :  { %10 = vsyncpa [#allocation4 + $0x1], 0 }
   0x4   :  { %11 = vsyncpa [#allocation5], 0 }
   0x5   :  { %13 = vsyncpa [#allocation5 + $0x1], 0  ;;  %s427_s11 = smov 0   ;;  %s429_s12 = smov 0  }
   0x6   :  { %s431_s13 = smov 0   ;;  %s433_s14 = smov 0  }
   0x7 LB: > { %s448_s0 = sadd.s32 4294967295, %s407_s14   ;;  %s253_s15 = sadd.s32 4294967294, %s407_s14   ;;  %s407_s14 = sphi %s433_s14, %s566_s14   ;;  %s403_s13 = sphi %s431_s13, %s565_s13   ;;  %s399_s12 = sphi %s429_s12, %s564_s12   ;;  %s395_s11 = sphi %s427_s11, %s563_s11  }
   0x8   : > { %s452_s16 = sadd.s32 1, %s407_s14   ;;  %s47_s17 = sadd.s32 1, %s403_s13 }
   0x9   : > { %s44_s18 = ssub.s32 %s407_s14, %s452_s16  ;;  %p54_p0 = scmp.ne.s32.totalorder %s403_s13, %s399_s12 }
   0xa   : > { %p45_p1 = scmp.eq.s32.totalorder %s44_s18, 0  ;;  %p55_p2 = scmp.eq.s32.totalorder %s407_s14, 0 }
   0xb   : > { %p60_p3 = scmp.ne.s32.totalorder %s399_s12, %s395_s11  ;;  %p61_p4 = scmp.eq.s32.totalorder %s448_s0, 0 }
   0xc   : > { %s464_s19 = scalar_select %p45_p1, %s403_s13, %s47_s17  }
   0xd   : > { %p466_p5 = por %p55_p2, %p54_p0  ;;  %p470_p6 = por %p61_p4, %p60_p3 }
   0xe   : > { %p84_p7 = scmp.eq.s32.totalorder %s448_s0, 1  ;;  %p90_p8 = scmp.eq.s32.totalorder %s253_s15, 1 }
   0xf   : > { %p277_p10 = scmp.lt.s32.totalorder %s407_s14, 2  ;;  %s113_s24 = sand.u32 1, %s403_s13  }
  0x10   : > { %p477_p11 = por %p84_p7, %p54_p0  ;;  %p481_p12 = por %p90_p8, %p60_p3 }
  0x11   : > { %s257_s25 = sshll.u32 %s407_s14, 3  ;;  %s256_s26 = sshll.u32 %s113_s24, 3 }
  0x12   : > { %s121_s29 = scalar_lea.hbm %s555_s1, %s257_s25  ;;  %s117_s3 = scalar_lea.vmem [#allocation3], %s256_s26 }
  0x13   : > { %s123_s30 = sshll.u32 %s121_s29, 4  ;;  %s125_s4 = sshll.u32 %s117_s3, 4  ;;  %s124_s30 = int_to_ptr.hbm [resolvable:$true] %s123_s30  ;;  %s126_s4 = int_to_ptr.vmem [resolvable:$true] %s125_s4 }
  0x14   : > { %p492_p13 = pnand %p277_p10, %p466_p5  ;;  %p258_p0 = scmp.ge.s32.totalorder %s407_s14, 1 }
  0x15   : > { %p130_p1 = scmp.lt.s32.totalorder %s407_s14, 3  ;;  %s114_s6 = scalar_lea.sflag [#allocation4], %s113_s24 }
  0x16   : > { %s311_s7 = sshra.s32 %s124_s30, 4  ;;  %p315_p3 = pneg %p492_p13  ;;  %s312_s7 = int_to_ptr.hbm [resolvable:$true] %s311_s7 }
  0x17   : > { %s313_s8 = scalar_lea.hbm %s312_s7, 8  ;;  %s318_s15 = scalar_lea.hbm %s555_s1, 16 }
  0x18   : > { %p314_p2 = scmp.ne.s32.totalorder %s312_s7, %s313_s8  ;;  %p319_p5 = scmp.lt.s32.totalorder %s312_s7, %s555_s1 }
  0x19   : > { %p320_p8 = scmp.lt.s32.totalorder %s318_s15, %s313_s8 }
  0x1a   : > { %p316_p4 = pnand %p315_p3, %p314_p2 }
  0x1b   : > { %p321_p10 = por %p320_p8, %p319_p5 }
  0x1c   : > { %p317_p7 = pneg %p316_p4 }
  0x1e   : > { %p322_p9 = pnand %p321_p10, %p317_p7 }
  0x20   : > { %325 = shalt.err (!%p322_p9)
}
  0x21   : > { %272 = dma.hbm_to_vmem [thread:$0]  (!%p492_p13), %s124_s30, 128, %s126_s4, %s114_s6  }
  0x22   : > { %p131_p2 = pnand %p258_p0, %p130_p1 }
  0x23   : > { %s513_s20 = sand.u32 (!%p131_p2), 1, %s399_s12  }
  0x24   : > { %134 = sbr.rel (%p131_p2) target bundleno = 57 (0x39), region = 28  ;;  %s259_s24 = sshll.u32 (!%p131_p2), %s513_s20, 3 }
  0x25   : > { %s137_s25 = scalar_lea.sflag (!%p131_p2), [#allocation4], %s513_s20  ;;  %s140_s26 = scalar_lea.vmem (!%p131_p2), [#allocation3], %s259_s24 }
  0x29   : > { %386 = dma.done.wait (%p470_p6), %s137_s25, 128  }
  0x2a   : > { %388 = vsyncadd (%p470_p6), %s137_s25, 4294967168  ;;  %s163_s27 = sld [smem:[#allocation2]]  ;;  %s262_s28 = sshll.u32 %s448_s0, 3  ;;  %v162_v0 = vld [vmem:[%s140_s26] sm:$0xff] }
  0x2b   : > { %s178_s3 = scalar_lea.hbm %s556_s2, %s262_s28  ;;  %s161_s4 = scalar_lea.vmem [#allocation6], %s259_s24 }
  0x2c   : > { %s180_s5 = sshll.u32 %s161_s4, 4  ;;  %s182_s6 = sshll.u32 %s178_s3, 4  ;;  %s181_s5 = int_to_ptr.vmem [resolvable:$true] %s180_s5  ;;  %s183_s6 = int_to_ptr.hbm [resolvable:$true] %s182_s6 }
  0x2d   : > { %s168_s21 = scalar_lea.sflag [#allocation5], %s513_s20  ;;  %s355_s7 = sshra.s32 %s183_s6, 4  ;;  %s356_s7 = int_to_ptr.hbm [resolvable:$true] %s355_s7 }
  0x2e   : > { %s357_s8 = scalar_lea.hbm %s356_s7, 8  ;;  %s361_s10 = scalar_lea.hbm %s556_s2, 16 }
  0x2f   : > { %p358_p6 = scmp.ne.s32.totalorder %s356_s7, %s357_s8  ;;  %p362_p0 = scmp.lt.s32.totalorder %s356_s7, %s556_s2 }
  0x30   : > { %v164_v1 = vstv %s163_s27  ;;  %p363_p1 = scmp.lt.s32.totalorder %s361_s10, %s357_s8 }
  0x31   : > { %v165_v2 = vmul.f32 %v164_v1, %v162_v0  ;;  %p359_p9 = pnand %p358_p6, %p477_p11 }
  0x32   : > { %p364_p3 = por %p363_p1, %p362_p0 }
  0x33   : > { %166 = vst [vmem:[%s161_s4] sm:$0xff] %v165_v2  ;;  %p360_p13 = pneg %p359_p9 }
  0x35   : > { %p365_p4 = pnand %p364_p3, %p360_p13 }
  0x37   : > { %368 = shalt.err (!%p365_p4)
}
  0x38   : > { %267 = dma.vmem_to_hbm [thread:$0]  (%p477_p11), %s181_s5, 128, %s183_s6, %s168_s21  }
  0x39 PF: > { %s194_s18 = sand.u32 1, %s395_s11   ;;  %p562_p7 = scmp.ge.s32.totalorder %s407_s14, 2 }
  0x3a   : > { %s195_s20 = scalar_lea.sflag [#allocation5], %s194_s18 }
  0x3b   : > { %p274_p5 = pnand %p562_p7, %p481_p12 }
  0x3d   : > { %p275_p8 = pneg %p274_p5 }
  0x3f   : > { %390 = dma.done.wait (%p275_p8), %s195_s20, 128  }
  0x40   : > { %392 = vsyncadd (%p275_p8), %s195_s20, 4294967168  ;;  %p16_p10 = scmp.ge.s32.totalorder %s452_s16, 4   ;;  %s563_s11 = smov %s399_s12 }
  0x41   : > { %s564_s12 = smov %s403_s13  ;;  %s565_s13 = smov %s464_s19 }
  0x42   : > { %s566_s14 = smov %s452_s16  ;;  %18 = sbr.rel (!%p16_p10) target bundleno = 7 (0x7), region = 73 }
  0x47   :  { %201 = vsyncpa [#allocation4], 1 }
  0x48   :  { %203 = vsyncpa [#allocation4 + $0x1], 1 }
  0x49   :  { %204 = vsyncpa [#allocation5], 1 }
  0x4a   :  { %206 = vsyncpa [#allocation5 + $0x1], 1 }

</bundles_post_ra>
